<compile_context>
chip_gen: v5e
topology: v5e:2x2
jax: 0.10.0
libtpu: 0.0.40
codegen_flags: <defaults>
</compile_context>

<pallas_src>
import jax
import jax.numpy as jnp
from jax.experimental import pallas as pl
from jax.experimental.pallas import tpu as pltpu

EPS = 1e-6  # matches the module's 1e-06


# ---------------------------------------------------------------------------
# Pass 1: per-graph statistics (accumulated over the row grid).
# ---------------------------------------------------------------------------
def graphnorm_stats_kernel(x_ref, m_ref, inv_n_ref, alpha_ref, gamma_ref,
                           mean_ref, gistd_ref):
    i = pl.program_id(0)

    @pl.when(i == 0)
    def _():
        mean_ref[...] = jnp.zeros_like(mean_ref)
        gistd_ref[...] = jnp.zeros_like(gistd_ref)

    x = x_ref[...].astype(jnp.float32)          # [tile_N, D]
    m = m_ref[...].astype(jnp.float32)          # [B, tile_N] one-hot membership

    # Segment sums via one-hot matmul (MXU): S1[g] = sum_g x, S2[g] = sum_g x^2
    mean_ref[...] += jnp.dot(m, x, preferred_element_type=jnp.float32)
    gistd_ref[...] += jnp.dot(m, x * x, preferred_element_type=jnp.float32)

    @pl.when(i == pl.num_programs(0) - 1)
    def _():
        inv_n = inv_n_ref[...]                  # [B, 1]
        alpha = alpha_ref[...]                  # [1, D] mean_scale
        gamma = gamma_ref[...]                  # [1, D] weight
        s1 = mean_ref[...]
        s2 = gistd_ref[...]
        mu = s1 * inv_n                         # per-graph mean        [B, D]
        # E[(x - a*mu)^2] = E[x^2] + (a^2 - 2a) * mu^2  (exact, tiling-safe)
        var = s2 * inv_n + (alpha * alpha - 2.0 * alpha) * (mu * mu)
        mean_ref[...] = alpha * mu              # alpha-scaled mean     [B, D]
        gistd_ref[...] = gamma / jnp.sqrt(var + EPS)   # weight / std   [B, D]


# ---------------------------------------------------------------------------
# Pass 2: normalize each row tile (independent -> "parallel").
# ---------------------------------------------------------------------------
def graphnorm_apply_kernel(x_ref, mt_ref, mean_ref, gistd_ref, beta_ref,
                           out_ref):
    x = x_ref[...].astype(jnp.float32)          # [tile_N, D]
    mt = mt_ref[...].astype(jnp.float32)        # [tile_N, B] one-hot rows
    # Gather per-node stats with a one-hot matmul broadcast (MXU).
    mean_node = jnp.dot(mt, mean_ref[...], preferred_element_type=jnp.float32)
    gistd_node = jnp.dot(mt, gistd_ref[...], preferred_element_type=jnp.float32)
    out_ref[...] = ((x - mean_node) * gistd_node + beta_ref[...]).astype(out_ref.dtype)


# ---------------------------------------------------------------------------
# Wrapper.
# ---------------------------------------------------------------------------
def graphnorm_forward(x, batch_list, weight, bias, mean_scale, *, tile_n=128):
    """GraphNorm forward for a batch of graphs packed along the row axis.

    x          : [N, D] node (or edge) features
    batch_list : [B]    number of rows belonging to each graph
    weight, bias, mean_scale : [D] learnable parameters
    """
    N, D = x.shape
    B = batch_list.shape[0]
    f32 = jnp.float32

    # Lane-dense padding: feature dim -> multiple of 128, rows -> multiple of tile_n.
    d_pad = ((D + 127) // 128) * 128
    n_pad = ((N + tile_n - 1) // tile_n) * tile_n
    n_tiles = n_pad // tile_n

    xp = jnp.zeros((n_pad, d_pad), f32).at[:N, :D].set(x.astype(f32))
    gamma = jnp.zeros((1, d_pad), f32).at[0, :D].set(weight.astype(f32))
    beta = jnp.zeros((1, d_pad), f32).at[0, :D].set(bias.astype(f32))
    alpha = jnp.zeros((1, d_pad), f32).at[0, :D].set(mean_scale.astype(f32))

    # One-hot membership: M[g, n] = 1 iff row n belongs to graph g.
    # Padded rows get graph id B (no match) so they contribute nothing.
    seg = jnp.repeat(jnp.arange(B, dtype=jnp.int32), batch_list,
                     total_repeat_length=N)
    seg_p = jnp.full((n_pad,), B, jnp.int32).at[:N].set(seg)
    membership = (seg_p[None, :] ==
                  jnp.arange(B, dtype=jnp.int32)[:, None]).astype(f32)   # [B, n_pad]
    membership_t = membership.T                                          # [n_pad, B]
    inv_n = (1.0 / jnp.maximum(batch_list.astype(f32), 1.0))[:, None]    # [B, 1]

    cparams = pltpu.CompilerParams(
        dimension_semantics=("arbitrary",),
        vmem_limit_bytes=32 * 1024 * 1024)

    mean_a, gistd = pl.pallas_call(
        graphnorm_stats_kernel,
        out_shape=(jax.ShapeDtypeStruct((B, d_pad), f32),
                   jax.ShapeDtypeStruct((B, d_pad), f32)),
        grid_spec=pltpu.PrefetchScalarGridSpec(
            num_scalar_prefetch=0,
            grid=(n_tiles,),
            in_specs=[
                pl.BlockSpec((tile_n, d_pad), lambda i: (i, 0)),   # x rows
                pl.BlockSpec((B, tile_n), lambda i: (0, i)),       # membership cols
                pl.BlockSpec((B, 1), lambda i: (0, 0)),            # 1/n per graph
                pl.BlockSpec((1, d_pad), lambda i: (0, 0)),        # mean_scale
                pl.BlockSpec((1, d_pad), lambda i: (0, 0)),        # weight
            ],
            out_specs=[
                pl.BlockSpec((B, d_pad), lambda i: (0, 0)),        # resident accumulators
                pl.BlockSpec((B, d_pad), lambda i: (0, 0)),
            ]),
        compiler_params=cparams,
    )(xp, membership, inv_n, alpha, gamma)

    cparams_par = pltpu.CompilerParams(
        dimension_semantics=("parallel",),
        vmem_limit_bytes=32 * 1024 * 1024)

    out_p = pl.pallas_call(
        graphnorm_apply_kernel,
        out_shape=jax.ShapeDtypeStruct((n_pad, d_pad), x.dtype),
        grid_spec=pltpu.PrefetchScalarGridSpec(
            num_scalar_prefetch=0,
            grid=(n_tiles,),
            in_specs=[
                pl.BlockSpec((tile_n, d_pad), lambda i: (i, 0)),   # x rows
                pl.BlockSpec((tile_n, B), lambda i: (i, 0)),       # membership^T rows
                pl.BlockSpec((B, d_pad), lambda i: (0, 0)),        # alpha*mean per graph
                pl.BlockSpec((B, d_pad), lambda i: (0, 0)),        # weight/std per graph
                pl.BlockSpec((1, d_pad), lambda i: (0, 0)),        # bias
            ],
            out_specs=pl.BlockSpec((tile_n, d_pad), lambda i: (i, 0))),
        compiler_params=cparams_par,
    )(xp, membership_t, mean_a, gistd, beta)

    return out_p[:N, :D]


# ---------------------------------------------------------------------------
# Pure-JAX reference (direct transcription of the PyTorch forward).
# ---------------------------------------------------------------------------
def graphnorm_ref(x, batch_list, weight, bias, mean_scale):
    N, D = x.shape
    B = batch_list.shape[0]
    seg = jnp.repeat(jnp.arange(B), batch_list, total_repeat_length=N)
    n = batch_list.astype(jnp.float32)[:, None]
    mean = jnp.zeros((B, D), jnp.float32).at[seg].add(x) / n
    sub = x - mean[seg] * mean_scale[None, :]
    var = jnp.zeros((B, D), jnp.float32).at[seg].add(sub * sub) / n
    std = jnp.sqrt(var + EPS)
    return weight[None, :] * sub / std[seg] + bias[None, :]


if __name__ == "__main__":
    key = jax.random.PRNGKey(0)
    k_x, k_e, k_w, k_b, k_a = jax.random.split(key, 5)

    # --- node features: lane-dense D=128, 6 graphs, 384 nodes (3 row tiles) ---
    batch_num_nodes = jnp.array([100, 37, 120, 20, 64, 43], dtype=jnp.int32)
    N = int(batch_num_nodes.sum())
    D = 128

    h = jax.random.normal(k_x, (N, D), jnp.float32)
    weight = 1.0 + 0.1 * jax.random.normal(k_w, (D,), jnp.float32)
    bias = 0.1 * jax.random.normal(k_b, (D,), jnp.float32)
    mean_scale = 1.0 + 0.1 * jax.random.normal(k_a, (D,), jnp.float32)

    h_out = graphnorm_forward(h, batch_num_nodes, weight, bias, mean_scale)
    jax.block_until_ready(h_out)
    h_ref = graphnorm_ref(h, batch_num_nodes, weight, bias, mean_scale)

    assert h_out.shape == (N, D)
    assert bool(jnp.all(jnp.isfinite(h_out)))
    assert bool(jnp.allclose(h_out, h_ref, atol=1e-4, rtol=1e-4)), \
        float(jnp.max(jnp.abs(h_out - h_ref)))

    # --- edge features: exercise the padding path (D=32 -> padded to 128, N=20) ---
    batch_num_edges = jnp.array([5, 11, 4], dtype=jnp.int32)
    E = int(batch_num_edges.sum())
    De = 32
    e = jax.random.normal(k_e, (E, De), jnp.float32)
    w_e = jnp.ones((De,), jnp.float32)
    b_e = jnp.zeros((De,), jnp.float32)
    a_e = jnp.ones((De,), jnp.float32)

    e_out = graphnorm_forward(e, batch_num_edges, w_e, b_e, a_e)
    jax.block_until_ready(e_out)
    e_ref = graphnorm_ref(e, batch_num_edges, w_e, b_e, a_e)

    assert e_out.shape == (E, De)
    assert bool(jnp.all(jnp.isfinite(e_out)))
    assert bool(jnp.allclose(e_out, e_ref, atol=1e-4, rtol=1e-4)), \
        float(jnp.max(jnp.abs(e_out - e_ref)))

    print("KERNEL_OK")
</pallas_src>

<mosaic_0001>
module attributes {stable_mosaic.version = 11 : i64} {
  func.func @graphnorm_stats_kernel(%arg0: i32, %arg1: memref<128x128xf32, #tpu.memory_space<vmem>>, %arg2: memref<6x128xf32, #tpu.memory_space<vmem>>, %arg3: memref<6x1xf32, #tpu.memory_space<vmem>>, %arg4: memref<1x128xf32, #tpu.memory_space<vmem>>, %arg5: memref<1x128xf32, #tpu.memory_space<vmem>>, %arg6: memref<6x128xf32, #tpu.memory_space<vmem>>, %arg7: memref<6x128xf32, #tpu.memory_space<vmem>>) attributes {dimension_semantics = [#tpu.dimension_semantics<arbitrary>], iteration_bounds = array<i64: 3>, scalar_prefetch = 0 : i64, scratch_operands = 0 : i64, tpu.core_type = #tpu.core_type<tc>, window_params = [{transform_indices = @transform_0, window_bounds = array<i64: 128, 128>}, {transform_indices = @transform_1, window_bounds = array<i64: 6, 128>}, {pipeline_mode = #tpu.pipeline_mode<synchronous>, transform_indices = @transform_2, window_bounds = array<i64: 6, 1>}, {pipeline_mode = #tpu.pipeline_mode<synchronous>, transform_indices = @transform_3, window_bounds = array<i64: 1, 128>}, {pipeline_mode = #tpu.pipeline_mode<synchronous>, transform_indices = @transform_4, window_bounds = array<i64: 1, 128>}, {pipeline_mode = #tpu.pipeline_mode<synchronous>, transform_indices = @transform_5, window_bounds = array<i64: 6, 128>}, {pipeline_mode = #tpu.pipeline_mode<synchronous>, transform_indices = @transform_6, window_bounds = array<i64: 6, 128>}]} {
    %c0_i32 = arith.constant 0 : i32
    %0 = arith.cmpi eq, %arg0, %c0_i32 : i32
    %1 = arith.extui %0 : i1 to i32
    %c0_i32_0 = arith.constant 0 : i32
    %2 = arith.cmpi ne, %1, %c0_i32_0 : i32
    scf.if %2 {
      %cst_14 = arith.constant 0.000000e+00 : f32
      %17 = vector.broadcast %cst_14 : f32 to vector<6x128xf32>
      %c0_15 = arith.constant 0 : index
      %c0_16 = arith.constant 0 : index
      %18 = vector.load %arg6[%c0_15, %c0_16] : memref<6x128xf32, #tpu.memory_space<vmem>>, vector<6x128xf32>
      tpu.vector_store %arg6[%c0_15, %c0_16], %17 {strides = array<i32>} : memref<6x128xf32, #tpu.memory_space<vmem>>, vector<6x128xf32>,
      %cst_17 = arith.constant 0.000000e+00 : f32
      %19 = vector.broadcast %cst_17 : f32 to vector<6x128xf32>
      %c0_18 = arith.constant 0 : index
      %c0_19 = arith.constant 0 : index
      %20 = vector.load %arg7[%c0_18, %c0_19] : memref<6x128xf32, #tpu.memory_space<vmem>>, vector<6x128xf32>
      tpu.vector_store %arg7[%c0_18, %c0_19], %19 {strides = array<i32>} : memref<6x128xf32, #tpu.memory_space<vmem>>, vector<6x128xf32>,
    } else {
    }
    %c0 = arith.constant 0 : index
    %c0_1 = arith.constant 0 : index
    %3 = vector.load %arg1[%c0, %c0_1] : memref<128x128xf32, #tpu.memory_space<vmem>>, vector<128x128xf32>
    %c0_2 = arith.constant 0 : index
    %c0_3 = arith.constant 0 : index
    %4 = vector.load %arg2[%c0_2, %c0_3] : memref<6x128xf32, #tpu.memory_space<vmem>>, vector<6x128xf32>
    %c0_4 = arith.constant 0 : index
    %c0_5 = arith.constant 0 : index
    %5 = vector.load %arg6[%c0_4, %c0_5] : memref<6x128xf32, #tpu.memory_space<vmem>>, vector<6x128xf32>
    %cst = arith.constant dense<0.000000e+00> : vector<6x128xf32>
    %6 = tpu.matmul %4, %3, %cst {dimension_numbers = #tpu.dot_dimension_numbers<[1], [0], [0], [1], [0, 0, 1, 1], [], []>} : vector<6x128xf32>, vector<128x128xf32>, vector<6x128xf32> -> vector<6x128xf32>
    %7 = arith.addf %5, %6 : vector<6x128xf32>
    %c0_6 = arith.constant 0 : index
    %c0_7 = arith.constant 0 : index
    %8 = vector.load %arg6[%c0_6, %c0_7] : memref<6x128xf32, #tpu.memory_space<vmem>>, vector<6x128xf32>
    tpu.vector_store %arg6[%c0_6, %c0_7], %7 {strides = array<i32>} : memref<6x128xf32, #tpu.memory_space<vmem>>, vector<6x128xf32>,
    %c0_8 = arith.constant 0 : index
    %c0_9 = arith.constant 0 : index
    %9 = vector.load %arg7[%c0_8, %c0_9] : memref<6x128xf32, #tpu.memory_space<vmem>>, vector<6x128xf32>
    %10 = arith.mulf %3, %3 : vector<128x128xf32>
    %cst_10 = arith.constant dense<0.000000e+00> : vector<6x128xf32>
    %11 = tpu.matmul %4, %10, %cst_10 {dimension_numbers = #tpu.dot_dimension_numbers<[1], [0], [0], [1], [0, 0, 1, 1], [], []>} : vector<6x128xf32>, vector<128x128xf32>, vector<6x128xf32> -> vector<6x128xf32>
    %12 = arith.addf %9, %11 : vector<6x128xf32>
    %c0_11 = arith.constant 0 : index
    %c0_12 = arith.constant 0 : index
    %13 = vector.load %arg7[%c0_11, %c0_12] : memref<6x128xf32, #tpu.memory_space<vmem>>, vector<6x128xf32>
    tpu.vector_store %arg7[%c0_11, %c0_12], %12 {strides = array<i32>} : memref<6x128xf32, #tpu.memory_space<vmem>>, vector<6x128xf32>,
    %c2_i32 = arith.constant 2 : i32
    %14 = arith.cmpi eq, %arg0, %c2_i32 : i32
    %15 = arith.extui %14 : i1 to i32
    %c0_i32_13 = arith.constant 0 : i32
    %16 = arith.cmpi ne, %15, %c0_i32_13 : i32
    scf.if %16 {
      %c0_14 = arith.constant 0 : index
      %c0_15 = arith.constant 0 : index
      %17 = vector.load %arg3[%c0_14, %c0_15] : memref<6x1xf32, #tpu.memory_space<vmem>>, vector<6x1xf32>
      %c0_16 = arith.constant 0 : index
      %c0_17 = arith.constant 0 : index
      %18 = vector.load %arg4[%c0_16, %c0_17] : memref<1x128xf32, #tpu.memory_space<vmem>>, vector<1x128xf32>
      %c0_18 = arith.constant 0 : index
      %c0_19 = arith.constant 0 : index
      %19 = vector.load %arg5[%c0_18, %c0_19] : memref<1x128xf32, #tpu.memory_space<vmem>>, vector<1x128xf32>
      %c0_20 = arith.constant 0 : index
      %c0_21 = arith.constant 0 : index
      %20 = vector.load %arg6[%c0_20, %c0_21] : memref<6x128xf32, #tpu.memory_space<vmem>>, vector<6x128xf32>
      %c0_22 = arith.constant 0 : index
      %c0_23 = arith.constant 0 : index
      %21 = vector.load %arg7[%c0_22, %c0_23] : memref<6x128xf32, #tpu.memory_space<vmem>>, vector<6x128xf32>
      %22 = vector.broadcast %17 : vector<6x1xf32> to vector<6x128xf32>
      %23 = arith.mulf %20, %22 : vector<6x128xf32>
      %24 = vector.broadcast %17 : vector<6x1xf32> to vector<6x128xf32>
      %25 = arith.mulf %21, %24 : vector<6x128xf32>
      %26 = arith.mulf %18, %18 : vector<1x128xf32>
      %cst_24 = arith.constant 2.000000e+00 : f32
      %27 = vector.broadcast %cst_24 : f32 to vector<1x128xf32>
      %28 = arith.mulf %27, %18 : vector<1x128xf32>
      %29 = arith.subf %26, %28 : vector<1x128xf32>
      %30 = arith.mulf %23, %23 : vector<6x128xf32>
      %31 = vector.broadcast %29 : vector<1x128xf32> to vector<6x128xf32>
      %32 = arith.mulf %31, %30 : vector<6x128xf32>
      %33 = arith.addf %25, %32 : vector<6x128xf32>
      %34 = vector.broadcast %18 : vector<1x128xf32> to vector<6x128xf32>
      %35 = arith.mulf %34, %23 : vector<6x128xf32>
      %c0_25 = arith.constant 0 : index
      %c0_26 = arith.constant 0 : index
      %36 = vector.load %arg6[%c0_25, %c0_26] : memref<6x128xf32, #tpu.memory_space<vmem>>, vector<6x128xf32>
      tpu.vector_store %arg6[%c0_25, %c0_26], %35 {strides = array<i32>} : memref<6x128xf32, #tpu.memory_space<vmem>>, vector<6x128xf32>,
      %cst_27 = arith.constant 9.99999997E-7 : f32
      %37 = vector.broadcast %cst_27 : f32 to vector<6x128xf32>
      %38 = arith.addf %33, %37 : vector<6x128xf32>
      %39 = math.sqrt %38 : vector<6x128xf32>
      %40 = vector.broadcast %19 : vector<1x128xf32> to vector<6x128xf32>
      %41 = arith.divf %40, %39 : vector<6x128xf32>
      %c0_28 = arith.constant 0 : index
      %c0_29 = arith.constant 0 : index
      %42 = vector.load %arg7[%c0_28, %c0_29] : memref<6x128xf32, #tpu.memory_space<vmem>>, vector<6x128xf32>
      tpu.vector_store %arg7[%c0_28, %c0_29], %41 {strides = array<i32>} : memref<6x128xf32, #tpu.memory_space<vmem>>, vector<6x128xf32>,
    } else {
    }
    return
  }
  func.func @transform_0(%arg0: i32) -> (i32, i32) {
    %c0_i32 = arith.constant 0 : i32
    %c0_i32_0 = arith.constant 0 : i32
    return %arg0, %c0_i32 : i32, i32
  }
  func.func @transform_1(%arg0: i32) -> (i32, i32) {
    %c0_i32 = arith.constant 0 : i32
    %c0_i32_0 = arith.constant 0 : i32
    return %c0_i32, %arg0 : i32, i32
  }
  func.func @transform_2(%arg0: i32) -> (i32, i32) {
    %c0_i32 = arith.constant 0 : i32
    %c0_i32_0 = arith.constant 0 : i32
    %c0_i32_1 = arith.constant 0 : i32
    return %c0_i32, %c0_i32_0 : i32, i32
  }
  func.func @transform_3(%arg0: i32) -> (i32, i32) {
    %c0_i32 = arith.constant 0 : i32
    %c0_i32_0 = arith.constant 0 : i32
    %c0_i32_1 = arith.constant 0 : i32
    return %c0_i32, %c0_i32_0 : i32, i32
  }
  func.func @transform_4(%arg0: i32) -> (i32, i32) {
    %c0_i32 = arith.constant 0 : i32
    %c0_i32_0 = arith.constant 0 : i32
    %c0_i32_1 = arith.constant 0 : i32
    return %c0_i32, %c0_i32_0 : i32, i32
  }
  func.func @transform_5(%arg0: i32) -> (i32, i32) {
    %c0_i32 = arith.constant 0 : i32
    %c0_i32_0 = arith.constant 0 : i32
    %c0_i32_1 = arith.constant 0 : i32
    return %c0_i32, %c0_i32_0 : i32, i32
  }
  func.func @transform_6(%arg0: i32) -> (i32, i32) {
    %c0_i32 = arith.constant 0 : i32
    %c0_i32_0 = arith.constant 0 : i32
    %c0_i32_1 = arith.constant 0 : i32
    return %c0_i32, %c0_i32_0 : i32, i32
  }
}

</mosaic_0001>

<bundles_post_ra>
// kernel: tpu_custom_call.1
= control target key start
LH: loop header
LB: loop body
LE: loop exit
PB: predicated region body
PF: predicated region fallthrough
CT: control target
= control target key end

     0   :  { %12 = vsyncpa [#allocation3], 0  ;;  %s1021_s0 = inlined_call_operand.hbm [shape: f32[384,128], index: 0, kind: input, shape index: {}]   ;;  %s1022_s1 = inlined_call_operand.hbm [shape: f32[6,384], index: 1, kind: input, shape index: {}]   ;;  %s1023_s2 = inlined_call_operand.vmem [shape: f32[6,1], index: 2, kind: input, shape index: {}]   ;;  %s1024_s3 = inlined_call_operand.vmem [shape: f32[1,128], index: 3, kind: input, shape index: {}]   ;;  %s1025_s4 = inlined_call_operand.vmem [shape: f32[1,128], index: 4, kind: input, shape index: {}]   ;;  %s1026_s5 = inlined_call_operand.hbm [shape: f32[6,128], index: 5, kind: output, shape index: {0}]   ;;  %s1027_s6 = inlined_call_operand.hbm [shape: f32[6,128], index: 6, kind: output, shape index: {1}]  }
   0x1   :  { %14 = vsyncpa [#allocation3 + $0x1], 0 }
   0x2   :  { %15 = vsyncpa [#allocation6], 0 }
   0x3   :  { %17 = vsyncpa [#allocation6 + $0x1], 0 }
   0x4   :  { %18 = vsyncpa [#allocation4], 0 }
   0x5   :  { %19 = vsyncpa [#allocation9], 0  ;;  %s846_s21 = smov 0   ;;  %s848_s22 = smov 0  }
   0x6   :  { %s850_s23 = smov 0   ;;  %s852_s24 = smov 0  }
   0x7 LB: > { %s865_s25 = sadd.s32 4294967295, %s803_s24   ;;  %s868_s26 = sadd.s32 1, %s803_s24   ;;  %s803_s24 = sphi %s852_s24, %s1035_s24   ;;  %s799_s23 = sphi %s850_s23, %s1034_s23   ;;  %s795_s22 = sphi %s848_s22, %s1033_s22   ;;  %s791_s21 = sphi %s846_s21, %s1032_s21  }
   0x8   : > { %s29_s27 = ssub.s32 %s803_s24, %s868_s26  ;;  %s32_s28 = sadd.s32 1, %s799_s23 }
   0x9   : > { %p30_p0 = scmp.eq.s32.totalorder %s29_s27, 0  ;;  %p39_p1 = scmp.ne.s32.totalorder %s799_s23, %s795_s22 }
   0xa   : > { %p40_p2 = scmp.eq.s32.totalorder %s803_s24, 0  ;;  %p45_p3 = scmp.ne.s32.totalorder %s795_s22, %s791_s21 }
   0xb   : > { %s878_s29 = scalar_select %p30_p0, %s799_s23, %s32_s28  }
   0xc   : > { %p880_p4 = por %p40_p2, %p39_p1  ;;  %p46_p5 = scmp.eq.s32.totalorder %s865_s25, 0 }
   0xd   : > { %p591_p6 = scmp.lt.s32.totalorder %s803_s24, 3  ;;  %s891_s8 = sand.u32 1, %s799_s23  }
   0xe   : > { %p886_p7 = por %p46_p5, %p45_p3  ;;  %s555_s9 = sshll.u32 %s891_s8, 7 }
   0xf   : > { %s571_s10 = sshll.u32 %s803_s24, 7  ;;  %s213_s14 = scalar_lea.vmem [#allocation2], %s555_s9 }
  0x10   : > { %s218_s13 = scalar_lea.hbm %s1021_s0, %s571_s10  ;;  %s221_s15 = sshll.u32 %s213_s14, 4  ;;  %s222_s15 = int_to_ptr.vmem [resolvable:$true] %s221_s15 }
  0x11   : > { %s219_s16 = sshll.u32 %s218_s13, 4  ;;  %p900_p8 = pnand %p591_p6, %p880_p4  ;;  %s220_s16 = int_to_ptr.hbm [resolvable:$true] %s219_s16 }
  0x12   : > { %p560_p9 = scmp.ge.s32.totalorder %s803_s24, 1  ;;  %s210_s18 = scalar_lea.sflag [#allocation3], %s891_s8 }
  0x13   : > { %s641_s19 = sshra.s32 %s220_s16, 4  ;;  %p645_p11 = pneg %p900_p8  ;;  %s642_s19 = int_to_ptr.hbm [resolvable:$true] %s641_s19 }
  0x14   : > { %s643_s20 = scalar_lea.hbm %s642_s19, 128  ;;  %s648_s28 = scalar_lea.hbm %s1021_s0, 384 }
  0x15   : > { %p644_p10 = scmp.ne.s32.totalorder %s642_s19, %s643_s20  ;;  %p649_p0 = scmp.lt.s32.totalorder %s642_s19, %s1021_s0 }
  0x16   : > { %p650_p1 = scmp.lt.s32.totalorder %s648_s28, %s643_s20 }
  0x17   : > { %p646_p12 = pnand %p645_p11, %p644_p10 }
  0x18   : > { %p651_p2 = por %p650_p1, %p649_p0 }
  0x19   : > { %p647_p13 = pneg %p646_p12 }
  0x1b   : > { %p652_p3 = pnand %p651_p2, %p647_p13 }
  0x1d   : > { %655 = shalt.err (!%p652_p3)
}
  0x1e   : > { %s805_s10 = smov 128   ;;  %s806_s11 = smov 8  }
  0x1f   : > { %587 = dma.hbm_to_vmem [thread:$0]  (!%p900_p8), %s220_s16, 2048, %s222_s15, %s210_s18, %s805_s10, %s805_s10, %s806_s11  }
  0x20   : > { %p248_p4 = scmp.lt.s32.totalorder %s803_s24, 4  ;;  %s558_s12 = sshll.u32 %s891_s8, 3 }
  0x21   : > { %s559_s13 = sshll.u32 %s803_s24, 3  ;;  %s235_s27 = scalar_lea.vmem [#allocation5], %s558_s12 }
  0x22   : > { %p924_p5 = pnand %p560_p9, %p248_p4  ;;  %s239_s21 = scalar_lea.hbm %s1022_s1, %s559_s13 }
  0x23   : > { %s243_s28 = sshll.u32 %s235_s27, 4  ;;  %s241_s30 = sshll.u32 %s239_s21, 4  ;;  %s244_s28 = int_to_ptr.vmem [resolvable:$true] %s243_s28  ;;  %s242_s30 = int_to_ptr.hbm [resolvable:$true] %s241_s30 }
  0x24   : > { %s232_s9 = scalar_lea.sflag [#allocation6], %s891_s8  ;;  %s671_s15 = sshra.s32 %s242_s30, 4  ;;  %s672_s15 = int_to_ptr.hbm [resolvable:$true] %s671_s15 }
  0x25   : > { %s673_s16 = scalar_lea.hbm %s672_s15, 8  ;;  %s678_s10 = scalar_lea.hbm %s1022_s1, 24 }
  0x26   : > { %p674_p6 = scmp.ne.s32.totalorder %s672_s15, %s673_s16  ;;  %p679_p12 = scmp.lt.s32.totalorder %s672_s15, %s1022_s1 }
  0x27   : > { %p680_p13 = scmp.lt.s32.totalorder %s678_s10, %s673_s16 }
  0x28   : > { %p676_p9 = pnand %p674_p6, %p645_p11 }
  0x29   : > { %p681_p0 = por %p680_p13, %p679_p12 }
  0x2a   : > { %p677_p10 = pneg %p676_p9 }
  0x2c   : > { %p682_p1 = pnand %p681_p0, %p677_p10 }
  0x2e   : > { %685 = shalt.err (!%p682_p1)
}
  0x2f   : > { %590 = dma.hbm_to_vmem [thread:$0]  (!%p900_p8), %s242_s30, 128, %s244_s28, %s232_s9  }
  0x30   : > { %252 = sbr.rel (%p924_p5) target bundleno = 408 (0x198), region = 40  ;;  %s254_s8 = sand.u32 (!%p924_p5), 1, %s795_s22  }
  0x31   : > { %s561_s12 = sshll.u32 (!%p924_p5), %s254_s8, 7  ;;  %s255_s19 = scalar_lea.sflag (!%p924_p5), [#allocation3], %s254_s8 }
  0x32   : > { %s946_s20 = scalar_lea.vmem (!%p924_p5), [#allocation2], %s561_s12 }
  0x35   : > { %774 = dma.done.wait (%p886_p7), %s255_s19, 2048  }
  0x36   : > { %776 = vsyncadd (%p886_p7), %s255_s19, 4294965248  ;;  %s562_s21 = sshll.u32 %s254_s8, 3  ;;  %s265_s27 = scalar_lea.sflag [#allocation6], %s254_s8 }
  0x37   : > { %s952_s17 = scalar_lea.vmem [#allocation5], %s562_s21 }
  0x38   : > { %778 = dma.done.wait (%p886_p7), %s265_s27, 128  }
  0x39   : > { %780 = vsyncadd (%p886_p7), %s265_s27, 4294967168  ;;  %p563_p8 = scmp.ne.s32.totalorder %s865_s25, 0 }
  0x3b   : > { %302 = sbr.rel (%p563_p8) target bundleno = 67 (0x43), region = 52 }
  0x40   : > { %v807_v0 = vmov 0.0  }
  0x41   : > { %303 = vst [vmem:[#allocation7] sm:$0x3f] %v807_v0 }
  0x42   : > { %304 = vst [vmem:[#allocation8] sm:$0x3f] %v807_v0 }
  0x43 PF: > { %v320_v1 = vld [vmem:[%s946_s20 + $0x78] sm:$0xff]  ;;  %v319_v2 = vld [vmem:[%s946_s20 + $0x70] sm:$0xff]  ;;  %v318_v3 = vld [vmem:[%s946_s20 + $0x68] sm:$0xff]  ;;  %p564_p7 = scmp.ne.s32.totalorder %s865_s25, 2 }
  0x44   : > { %323 = vmatpush.msra.mxu0 %v320_v1  ;;  %v361_v4 = vmul.f32 %v320_v1, %v320_v1  ;;  %v360_v5 = vmul.f32 %v319_v2, %v319_v2  ;;  %v317_v6 = vld [vmem:[%s946_s20 + $0x60] sm:$0xff]  ;;  %v359_v7 = vmul.f32 %v318_v3, %v318_v3  ;;  %v316_v8 = vld [vmem:[%s946_s20 + $0x58] sm:$0xff]  ;;  %v315_v10 = vld [vmem:[%s946_s20 + $0x50] sm:$0xff] }
  0x45   : > { %v358_v9 = vmul.f32 %v317_v6, %v317_v6  ;;  %v357_v11 = vmul.f32 %v316_v8, %v316_v8  ;;  %v314_v12 = vld [vmem:[%s946_s20 + $0x48] sm:$0xff]  ;;  %v356_v13 = vmul.f32 %v315_v10, %v315_v10  ;;  %v313_v14 = vld [vmem:[%s946_s20 + $0x40] sm:$0xff]  ;;  %v312_v16 = vld [vmem:[%s946_s20 + $0x38] sm:$0xff] }
  0x46   : > { %362 = vmatpush.msra.mxu1 %v361_v4  ;;  %324 = vmatpush.msra.mxu0 %v319_v2  ;;  %v355_v15 = vmul.f32 %v314_v12, %v314_v12  ;;  %v354_v17 = vmul.f32 %v313_v14, %v313_v14  ;;  %v311_v18 = vld [vmem:[%s946_s20 + $0x30] sm:$0xff]  ;;  %v353_v19 = vmul.f32 %v312_v16, %v312_v16  ;;  %v310_v20 = vld [vmem:[%s946_s20 + $0x28] sm:$0xff]  ;;  %v309_v22 = vld [vmem:[%s946_s20 + $0x20] sm:$0xff] }
  0x47   : > { %v352_v21 = vmul.f32 %v311_v18, %v311_v18  ;;  %v351_v23 = vmul.f32 %v310_v20, %v310_v20  ;;  %v308_v24 = vld [vmem:[%s946_s20 + $0x18] sm:$0xff]  ;;  %v350_v25 = vmul.f32 %v309_v22, %v309_v22  ;;  %v307_v26 = vld [vmem:[%s946_s20 + $0x10] sm:$0xff]  ;;  %v306_v28 = vld [vmem:[%s946_s20 + $0x8] sm:$0xff] }
  0x48   : > { %363 = vmatpush.msra.mxu1 %v360_v5  ;;  %325 = vmatpush.msra.mxu0 %v318_v3  ;;  %v349_v27 = vmul.f32 %v308_v24, %v308_v24  ;;  %v348_v29 = vmul.f32 %v307_v26, %v307_v26  ;;  %v305_v30 = vld [vmem:[%s946_s20] sm:$0xff]  ;;  %v347_v31 = vmul.f32 %v306_v28, %v306_v28  ;;  %v322_v34 = vld [vmem:[#allocation7] sm:$0x3f] }
  0x49   : > { %v346_v32 = vmul.f32 %v305_v30, %v305_v30  ;;  %v321_v33 = vld [vmem:[%s952_s17] sm:$0x3f]  ;;  %v345_v36 = vld [vmem:[#allocation8] sm:$0x3f] }
  0x4a   : > { %364 = vmatpush.msra.mxu1 %v359_v7  ;;  %326 = vmatpush.msra.mxu0 %v317_v6 }
  0x4c   : > { %365 = vmatpush.msra.mxu1 %v358_v9  ;;  %327 = vmatpush.msra.mxu0 %v316_v8 }
  0x4e   : > { %366 = vmatpush.msra.mxu1 %v357_v11  ;;  %328 = vmatpush.msra.mxu0 %v315_v10 }
  0x50   : > { %367 = vmatpush.msra.mxu1 %v356_v13  ;;  %329 = vmatpush.msra.mxu0 %v314_v12 }
  0x52   : > { %368 = vmatpush.msra.mxu1 %v355_v15  ;;  %330 = vmatpush.msra.mxu0 %v313_v14 }
  0x54   : > { %369 = vmatpush.msra.mxu1 %v354_v17  ;;  %331 = vmatpush.msra.mxu0 %v312_v16 }
  0x56   : > { %370 = vmatpush.msra.mxu1 %v353_v19  ;;  %332 = vmatpush.msra.mxu0 %v311_v18 }
  0x58   : > { %371 = vmatpush.msra.mxu1 %v352_v21  ;;  %333 = vmatpush.msra.mxu0 %v310_v20 }
  0x5a   : > { %372 = vmatpush.msra.mxu1 %v351_v23  ;;  %334 = vmatpush.msra.mxu0 %v309_v22 }
  0x5c   : > { %373 = vmatpush.msra.mxu1 %v350_v25  ;;  %335 = vmatpush.msra.mxu0 %v308_v24 }
  0x5e   : > { %374 = vmatpush.msra.mxu1 %v349_v27  ;;  %336 = vmatpush.msra.mxu0 %v307_v26 }
  0x60   : > { %375 = vmatpush.msra.mxu1 %v348_v29  ;;  %337 = vmatpush.msra.mxu0 %v306_v28 }
  0x62   : > { %376 = vmatpush.msra.mxu1 %v347_v31  ;;  %338 = vmatpush.msra.mxu0 %v305_v30 }
  0x63   : > { %339 = vmatmul.f32.vlgmr.msra.gmra.mxu0 %v321_v33 }
  0x64   : > { %377 = vmatpush.msra.mxu1 %v346_v32 }
  0x65   : > { %378 = vmatmul.f32.vlgmr.msra.gmra.mxu1 %v321_v33 }
  0xe0   : > { %v340_v35 = vpop.f32.mrf.mxu0 }
  0xe1   : > { %v343_v37 = vadd.f32 %v340_v35, %v322_v34  ;;  %387 = sbr.rel (%p564_p7) target bundleno = 398 (0x18e), region = 56 }
  0xe2   : > { %v379_v38 = vpop.f32.mrf.mxu1 }
  0xe3   : > { %344 = vst [vmem:[#allocation7] sm:$0x3f] %v343_v37  ;;  %v382_v39 = vadd.f32 %v379_v38, %v345_v36 }
  0xe5   : > { %383 = vst [vmem:[#allocation8] sm:$0x3f] %v382_v39 }
  0xe6   : > { %v388_v40 = vld [vmem:[%s1023_s2] sm:$0x3f]  ;;  %v808_v41 = vmov 0  }
  0xe7   : > { %634 = vset.pattern.permute.xlu0 %v808_v41  ;;  %v389_v42 = vld [vmem:[%s1024_s3] sm:$0x1] }
  0xe8   : > { %395 = vperm.xlu0 %634, %v388_v40   ;;  %v400_v43 = vmul.f32 %v389_v42, %v389_v42  ;;  %v401_v44 = vmul.f32 2.0, %v389_v42  ;;  %v635_v47 = vld [vmem:[%s1024_s3] ss:$0 sm:$0xff] }
  0xe9   : > { %v636_v10 = vld [vmem:[%s1025_s4] ss:$0 sm:$0xff] }
  0xea   : > { %v402_v45 = vsub.f32 %v400_v43, %v401_v44  ;;  %v391_v46 = vld [vmem:[#allocation7] sm:$0x3f] }
  0xec   : > { %v405_v49 = vperm.slane %v402_v45, 0  ;;  %v392_v51 = vld [vmem:[#allocation8] sm:$0x3f] }
 0x15a   : > { %v396_v48 = vpop.permute.xlu0 %395 }
 0x15b   : > { %v398_v50 = vmul.f32 %v396_v48, %v391_v46  ;;  %v399_v54 = vmul.f32 %v396_v48, %v392_v51 }
 0x15d   : > { %v403_v52 = vmul.f32 %v398_v50, %v398_v50  ;;  %v412_v53 = vmul.f32 %v635_v47, %v398_v50 }
 0x15f   : > { %v407_v55 = vmul.f32 %v405_v49, %v403_v52  ;;  %413 = vst [vmem:[#allocation7] sm:$0x3f] %v412_v53 }
 0x161   : > { %v408_v56 = vadd.f32 %v407_v55, %v399_v54 }
 0x163   : > { %v414_v57 = vadd.f32 1e-06, %v408_v56 }
 0x165   : > { %637 = vrsqrt.f32 %v414_v57  ;;  %vm422_vm0 = vcmp.eq.f32.partialorder %v414_v57, inf  ;;  %v425_v1 = vand.u32 2147483648, %v414_v57  ;;  %vm424_vm1 = vcmp.eq.f32.partialorder %v414_v57, 0.0 }
 0x16b   : > { %v638_v58 = vpop.eup %637 }
 0x16c   : > { %v416_v59 = vmul.f32 %v638_v58, %v414_v57 }
 0x16e   : > { %v417_v60 = vmul.f32 %v638_v58, %v416_v59 }
 0x170   : > { %v418_v61 = vmul.f32 0.5, %v417_v60 }
 0x172   : > { %v419_v62 = vsub.f32 1.5, %v418_v61 }
 0x174   : > { %v420_v63 = vmul.f32 %v638_v58, %v419_v62 }
 0x176   : > { %v421_v0 = vmul.f32 %v420_v63, %v414_v57 }
 0x178   : > { %v423_v2 = vsel %vm422_vm0, %v414_v57, %v421_v0 }
 0x179   : > { %v426_v3 = vsel %vm424_vm1, %v425_v1, %v423_v2 }
 0x17a   : > { %639 = vrcp.f32 %v426_v3  ;;  %v441_v7 = vand.u32 2147483648, %v426_v3  ;;  %v439_v9 = vand.u32 2147483647, %v426_v3  ;;  %vm435_vm3 = vweird.f32 %v426_v3 }
 0x17c   : > { %v442_v12 = vor.u32 1.1754944e-38, %v441_v7  ;;  %vm440_vm5 = vcmp.eq.f32.partialorder %v439_v9, 8.507059e+37 }
 0x180   : > { %v640_v4 = vpop.eup %639 }
 0x181   : > { %v431_v5 = vmul.f32 %v640_v4, %v426_v3  ;;  %vm436_vm2 = vweird.f32 %v640_v4 }
 0x182   : > { %vm437_vm4 = vmor %vm435_vm3, %vm436_vm2 }
 0x183   : > { %v432_v6 = vsub.f32 1.0, %v431_v5 }
 0x185   : > { %v433_v8 = vmul.f32 %v640_v4, %v432_v6 }
 0x187   : > { %v434_v11 = vadd.f32 %v640_v4, %v433_v8 }
 0x189   : > { %v438_v13 = vsel %vm437_vm4, %v640_v4, %v434_v11 }
 0x18a   : > { %v443_v14 = vsel %vm440_vm5, %v442_v12, %v438_v13 }
 0x18b   : > { %v444_v15 = vmul.f32 %v636_v10, %v443_v14 }
 0x18d   : > { %445 = vst [vmem:[#allocation8] sm:$0x3f] %v444_v15 }
 0x18e PF: > { %p592_p11 = scmp.eq.s32.totalorder %s865_s25, 2  ;;  %s809_s18 = smov [#allocation7]  }
 0x18f   : > { %s452_s10 = sshll.u32 %s809_s18, 4  ;;  %s454_s8 = sshll.u32 %s1026_s5, 4  ;;  %s453_s10 = int_to_ptr.vmem [resolvable:$true] %s452_s10  ;;  %s455_s8 = int_to_ptr.hbm [resolvable:$true] %s454_s8 }
 0x190   : > { %577 = dma.vmem_to_hbm [thread:$0]  (%p592_p11), %s453_s10, 128, %s455_s8, [#allocation4]  }
 0x191   : > { %s466_s20 = sshll.u32 %s1027_s6, 4  ;;  %s810_s21 = smov [#allocation8]   ;;  %s467_s20 = int_to_ptr.hbm [resolvable:$true] %s466_s20 }
 0x192   : > { %s464_s27 = sshll.u32 %s810_s21, 4  ;;  %s465_s27 = int_to_ptr.vmem [resolvable:$true] %s464_s27 }
 0x193   : > { %579 = dma.vmem_to_hbm [thread:$0]  (%p592_p11), %s465_s27, 128, %s467_s20, [#allocation9]  }
 0x194   : > { %782 = dma.done.wait (%p592_p11), [#allocation4], 128  }
 0x195   : > { %784 = vsyncadd (%p592_p11), [#allocation4], 4294967168 }
 0x196   : > { %786 = dma.done.wait (%p592_p11), [#allocation9], 128  }
 0x197   : > { %788 = vsyncadd (%p592_p11), [#allocation9], 4294967168 }
 0x198 PF: > { %p22_p2 = scmp.ge.s32.totalorder %s868_s26, 5   ;;  %s1032_s21 = smov %s795_s22 }
 0x199   : > { %s1033_s22 = smov %s799_s23  ;;  %s1034_s23 = smov %s878_s29 }
 0x19a   : > { %s1035_s24 = smov %s868_s26  ;;  %24 = sbr.rel (!%p22_p2) target bundleno = 7 (0x7), region = 106 }
 0x19f   :  { %485 = vsyncpa [#allocation3], 1 }
 0x1a0   :  { %487 = vsyncpa [#allocation3 + $0x1], 1 }
 0x1a1   :  { %488 = vsyncpa [#allocation6], 1 }
 0x1a2   :  { %490 = vsyncpa [#allocation6 + $0x1], 1 }
 0x1a3   :  { %491 = vsyncpa [#allocation4], 1 }
 0x1a4   :  { %493 = vsyncpa [#allocation4 + $0x1], 1 }
 0x1a5   :  { %494 = vsyncpa [#allocation9], 1 }

</bundles_post_ra>
